<compile_context>
chip_gen: v5e
topology: v5e:2x2
jax: 0.10.0
libtpu: 0.0.40
codegen_flags: <defaults>
</compile_context>

<pallas_src>
import functools

import jax
import jax.numpy as jnp
from jax.experimental import pallas as pl
from jax.experimental.pallas import tpu as pltpu

_LANE = 128


def _scaling_kernel(a_ref, b_ref, x_ref, o_ref, *, C):
    # a_ref / b_ref : (C,) f32 in SMEM  (1/scale, -shift/scale per channel).
    # x_ref / o_ref : (br, bl) lane-dense VMEM tiles.
    br = x_ref.shape[0]
    row0 = pl.program_id(0) * br
    rows = row0 + jax.lax.broadcasted_iota(jnp.int32, (br, 1), 0)
    ch = rows % C  # channel of each (n, c) row

    a = jnp.full((br, 1), a_ref[0], dtype=jnp.float32)
    b = jnp.full((br, 1), b_ref[0], dtype=jnp.float32)
    for c in range(1, C):  # C is tiny (3); a couple of VPU selects
        a = jnp.where(ch == c, a_ref[c], a)
        b = jnp.where(ch == c, b_ref[c], b)

    # (x - shift) / scale == x * (1/scale) + (-shift/scale), in f32.
    xf = x_ref[...].astype(jnp.float32)
    o_ref[...] = (xf * a + b).astype(o_ref.dtype)


def scaling_layer(x, shift, scale, *, target_tile_bytes=4 << 20):
    """x: (N, C, H, W); shift/scale: (C,). Returns (x - shift) / scale."""
    N, C, H, W = x.shape
    dtype = x.dtype
    itemsize = jnp.dtype(dtype).itemsize

    # Per-channel multiplier / bias, kept in f32 for accuracy (esp. bf16 x).
    # Note: scale == 0 yields inf/nan, same as the reference divide.
    a = 1.0 / scale.astype(jnp.float32)
    b = (-shift.astype(jnp.float32)) * a

    # Lane-dense 2D view: rows = (n, c) pairs, lanes = H*W.  reshape only —
    # no pad, no copy, no output slice.
    R, L = N * C, H * W
    x2 = x.reshape(R, L)

    sub = 32 // itemsize  # sublane alignment: 8 (f32), 16 (bf16), 32 (int8)

    # ---- tile selection by byte budget -------------------------------------
    # Rows: R = N*C is usually tiny (C=3), so keep all rows in one block
    # unless it would blow the budget even at the minimum 128-lane width.
    max_whole_rows = max(sub, (target_tile_bytes // (_LANE * itemsize)) // sub * sub)
    br = R if R <= max_whole_rows else max_whole_rows  # full dim or sublane-aligned
    # Lanes: spend the remaining budget in multiples of 128 (or the full dim).
    bl = max(_LANE, (target_tile_bytes // (br * itemsize)) // _LANE * _LANE)
    if bl >= L:
        bl = L  # full dim -> always a legal block shape

    # Guarantee >= 2 grid steps on a parallel axis when possible so a v7x
    # megacore can shard the stream across both TensorCores.
    if pl.cdiv(R, br) == 1 and pl.cdiv(L, bl) == 1 and L >= 2 * _LANE:
        half = (L + 1) // 2
        bl = (half + _LANE - 1) // _LANE * _LANE  # multiple of 128; edge masked

    grid = (pl.cdiv(R, br), pl.cdiv(L, bl))

    # Pipeline footprint ~= 2 bufs x (in tile + out tile) ~= 4x tile bytes.
    tile_bytes = br * bl * itemsize
    vmem_limit = int(min(32 << 20, max(16 << 20, 5 * tile_bytes + (1 << 20))))

    out2 = pl.pallas_call(
        functools.partial(_scaling_kernel, C=C),
        out_shape=jax.ShapeDtypeStruct((R, L), dtype),
        grid=grid,
        in_specs=[
            pl.BlockSpec(memory_space=pltpu.MemorySpace.SMEM),  # a: (C,)
            pl.BlockSpec(memory_space=pltpu.MemorySpace.SMEM),  # b: (C,)
            pl.BlockSpec((br, bl), lambda i, j: (i, j)),        # x slab
        ],
        out_specs=pl.BlockSpec((br, bl), lambda i, j: (i, j)),
        compiler_params=pltpu.CompilerParams(
            dimension_semantics=("parallel", "parallel"),
            vmem_limit_bytes=vmem_limit,
        ),
    )(a, b, x2)

    return out2.reshape(N, C, H, W)


if __name__ == "__main__":
    # Buffers exactly as in the PyTorch module (deterministic constants).
    shift = jnp.array([-0.03, -0.088, -0.188], dtype=jnp.float32)
    scale = jnp.array([0.458, 0.448, 0.45], dtype=jnp.float32)

    # Small NCHW input: batch=2, channels=3 (fixed by the module), spatial=16.
    key = jax.random.PRNGKey(0)
    x = jax.random.normal(key, (2, 3, 16, 16), dtype=jnp.float32)

    out = jax.block_until_ready(scaling_layer(x, shift, scale))

    # Reference in plain JAX (same broadcasting as PyTorch). The kernel uses
    # x * (1/scale) + (-shift/scale) in f32 (ulp-level diff vs a true divide).
    ref = (x - shift[None, :, None, None]) / scale[None, :, None, None]
    assert jnp.allclose(out, ref, atol=1e-5, rtol=1e-5), "mismatch vs reference"

    print("KERNEL_OK")
</pallas_src>

<mosaic_0001>
module attributes {stable_mosaic.version = 11 : i64} {
  func.func @_scaling_kernel(%arg0: i32, %arg1: i32, %arg2: memref<3xf32, #tpu.memory_space<smem>>, %arg3: memref<3xf32, #tpu.memory_space<smem>>, %arg4: memref<6x128xf32, #tpu.memory_space<vmem>>, %arg5: memref<6x128xf32, #tpu.memory_space<vmem>>) attributes {dimension_semantics = [#tpu.dimension_semantics<parallel>, #tpu.dimension_semantics<parallel>], iteration_bounds = array<i64: 1, 2>, scalar_prefetch = 0 : i64, scratch_operands = 0 : i64, tpu.core_type = #tpu.core_type<tc>, window_params = [{transform_indices = @transform_0, window_bounds = array<i64: 3>}, {transform_indices = @transform_1, window_bounds = array<i64: 3>}, {transform_indices = @transform_2, window_bounds = array<i64: 6, 128>}, {transform_indices = @transform_3, window_bounds = array<i64: 6, 128>}]} {
    %c6_i32 = arith.constant 6 : i32
    %0 = arith.muli %arg0, %c6_i32 : i32
    %1 = tpu.iota {dimensions = array<i32: 0>} : vector<6x1xi32>
    %2 = vector.broadcast %0 : i32 to vector<6x1xi32>
    %3 = arith.addi %2, %1 : vector<6x1xi32>
    %c3_i32 = arith.constant 3 : i32
    %c0_i32 = arith.constant 0 : i32
    %4 = arith.cmpi eq, %c3_i32, %c0_i32 : i32
    %c1_i32 = arith.constant 1 : i32
    %5 = arith.select %4, %c1_i32, %c3_i32 : i32
    %6 = vector.broadcast %5 : i32 to vector<6x1xi32>
    %7 = arith.remsi %3, %6 : vector<6x1xi32>
    %c0_i32_0 = arith.constant 0 : i32
    %8 = vector.broadcast %c0_i32_0 : i32 to vector<6x1xi32>
    %9 = arith.cmpi ne, %7, %8 : vector<6x1xi32>
    %c0_i32_1 = arith.constant 0 : i32
    %10 = vector.broadcast %c0_i32_1 : i32 to vector<6x1xi32>
    %11 = arith.cmpi slt, %7, %10 : vector<6x1xi32>
    %c0_i32_2 = arith.constant 0 : i32
    %12 = arith.cmpi slt, %5, %c0_i32_2 : i32
    %13 = vector.broadcast %12 : i1 to vector<6x1xi1>
    %14 = vector.broadcast %13 : vector<6x1xi1> to vector<6x1xi1>
    %15 = arith.xori %11, %14 : vector<6x1xi1>
    %16 = arith.andi %15, %9 : vector<6x1xi1>
    %17 = vector.broadcast %5 : i32 to vector<6x1xi32>
    %18 = arith.addi %7, %17 : vector<6x1xi32>
    %19 = arith.select %16, %18, %7 : vector<6x1xi1>, vector<6x1xi32>
    %c0 = arith.constant 0 : index
    %20 = memref.load %arg2[%c0] : memref<3xf32, #tpu.memory_space<smem>>
    %21 = vector.broadcast %20 : f32 to vector<6x1xf32>
    %c0_3 = arith.constant 0 : index
    %22 = memref.load %arg3[%c0_3] : memref<3xf32, #tpu.memory_space<smem>>
    %23 = vector.broadcast %22 : f32 to vector<6x1xf32>
    %c1_i32_4 = arith.constant 1 : i32
    %24 = vector.broadcast %c1_i32_4 : i32 to vector<6x1xi32>
    %25 = arith.cmpi eq, %19, %24 : vector<6x1xi32>
    %c1 = arith.constant 1 : index
    %26 = memref.load %arg2[%c1] : memref<3xf32, #tpu.memory_space<smem>>
    %27 = vector.broadcast %26 : f32 to vector<6x1xf32>
    %28 = arith.select %25, %27, %21 : vector<6x1xi1>, vector<6x1xf32>
    %c1_i32_5 = arith.constant 1 : i32
    %29 = vector.broadcast %c1_i32_5 : i32 to vector<6x1xi32>
    %30 = arith.cmpi eq, %19, %29 : vector<6x1xi32>
    %c1_6 = arith.constant 1 : index
    %31 = memref.load %arg3[%c1_6] : memref<3xf32, #tpu.memory_space<smem>>
    %32 = vector.broadcast %31 : f32 to vector<6x1xf32>
    %33 = arith.select %30, %32, %23 : vector<6x1xi1>, vector<6x1xf32>
    %c2_i32 = arith.constant 2 : i32
    %34 = vector.broadcast %c2_i32 : i32 to vector<6x1xi32>
    %35 = arith.cmpi eq, %19, %34 : vector<6x1xi32>
    %c2 = arith.constant 2 : index
    %36 = memref.load %arg2[%c2] : memref<3xf32, #tpu.memory_space<smem>>
    %37 = vector.broadcast %36 : f32 to vector<6x1xf32>
    %38 = arith.select %35, %37, %28 : vector<6x1xi1>, vector<6x1xf32>
    %c2_i32_7 = arith.constant 2 : i32
    %39 = vector.broadcast %c2_i32_7 : i32 to vector<6x1xi32>
    %40 = arith.cmpi eq, %19, %39 : vector<6x1xi32>
    %c2_8 = arith.constant 2 : index
    %41 = memref.load %arg3[%c2_8] : memref<3xf32, #tpu.memory_space<smem>>
    %42 = vector.broadcast %41 : f32 to vector<6x1xf32>
    %43 = arith.select %40, %42, %33 : vector<6x1xi1>, vector<6x1xf32>
    %c0_9 = arith.constant 0 : index
    %c0_10 = arith.constant 0 : index
    %44 = vector.load %arg4[%c0_9, %c0_10] : memref<6x128xf32, #tpu.memory_space<vmem>>, vector<6x128xf32>
    %45 = vector.broadcast %38 : vector<6x1xf32> to vector<6x128xf32>
    %46 = arith.mulf %44, %45 : vector<6x128xf32>
    %47 = vector.broadcast %43 : vector<6x1xf32> to vector<6x128xf32>
    %48 = arith.addf %46, %47 : vector<6x128xf32>
    %c0_11 = arith.constant 0 : index
    %c0_12 = arith.constant 0 : index
    %49 = vector.load %arg5[%c0_11, %c0_12] : memref<6x128xf32, #tpu.memory_space<vmem>>, vector<6x128xf32>
    tpu.vector_store %arg5[%c0_11, %c0_12], %48 {strides = array<i32>} : memref<6x128xf32, #tpu.memory_space<vmem>>, vector<6x128xf32>,
    return
  }
  func.func @transform_0(%arg0: i32, %arg1: i32) -> i32 {
    %c0_i32 = arith.constant 0 : i32
    %c0_i32_0 = arith.constant 0 : i32
    return %c0_i32 : i32
  }
  func.func @transform_1(%arg0: i32, %arg1: i32) -> i32 {
    %c0_i32 = arith.constant 0 : i32
    %c0_i32_0 = arith.constant 0 : i32
    return %c0_i32 : i32
  }
  func.func @transform_2(%arg0: i32, %arg1: i32) -> (i32, i32) {
    %c0_i32 = arith.constant 0 : i32
    return %arg0, %arg1 : i32, i32
  }
  func.func @transform_3(%arg0: i32, %arg1: i32) -> (i32, i32) {
    %c0_i32 = arith.constant 0 : i32
    return %arg0, %arg1 : i32, i32
  }
}

</mosaic_0001>

<bundles_post_ra>
// kernel: tpu_custom_call.1
= control target key start
LH: loop header
LB: loop body
LE: loop exit
PB: predicated region body
PF: predicated region fallthrough
CT: control target
= control target key end

     0   :  { %8 = vsyncpa [#allocation5], 0  ;;  %s849_s0 = inlined_call_operand.hbm [shape: f32[3], index: 0, kind: input, shape index: {}]   ;;  %s850_s1 = inlined_call_operand.hbm [shape: f32[3], index: 1, kind: input, shape index: {}]   ;;  %s851_s2 = inlined_call_operand.hbm [shape: f32[6,256], index: 2, kind: input, shape index: {}]   ;;  %s852_s3 = inlined_call_operand.hbm [shape: f32[6,256], index: 3, kind: output, shape index: {}]  }
   0x1   :  { %9 = vsyncpa [#allocation7], 0 }
   0x2   :  { %10 = vsyncpa [#allocation3], 0 }
   0x3   :  { %12 = vsyncpa [#allocation3 + $0x1], 0 }
   0x4   :  { %13 = vsyncpa [#allocation4], 0 }
   0x5   :  { %15 = vsyncpa [#allocation4 + $0x1], 0  ;;  %s696_s12 = smov 0   ;;  %s698_s13 = smov 0  }
   0x6   :  { %s700_s14 = smov 0   ;;  %s702_s15 = smov 0  }
   0x7   :  { %s704_s16 = smov 0   ;;  %s706_s17 = smov 0  }
   0x8 LB: > { %s416_s18 = sadd.s32 4294967295, %s671_s17   ;;  %s417_s19 = sadd.s32 4294967294, %s671_s17   ;;  %s671_s17 = sphi %s706_s17, %s21_s17   ;;  %s667_s16 = sphi %s704_s16, %s862_s16   ;;  %s663_s15 = sphi %s702_s15, %s861_s15   ;;  %s659_s14 = sphi %s700_s14, %s860_s14   ;;  %s655_s13 = sphi %s698_s13, %s859_s13   ;;  %s651_s12 = sphi %s696_s12, %s858_s12  }
   0x9   : > { %p97_p0 = scmp.ne.s32.totalorder %s655_s13, %s651_s12  ;;  %p730_p1 = scmp.eq.s32.totalorder %s416_s18, 0 }
   0xa   : > { %p129_p2 = scmp.eq.s32.totalorder %s417_s19, 1  ;;  %p418_p4 = scmp.ge.s32.totalorder %s671_s17, 1 }
   0xb   : > { %p736_p3 = por %p730_p1, %p97_p0  ;;  %p136_p6 = scmp.lt.s32.totalorder %s671_s17, 3 }
   0xc   : > { %p741_p5 = por %p129_p2, %p97_p0  ;;  %s148_s25 = sshll.u32 %s849_s0, 4  ;;  %s149_s25 = int_to_ptr.hbm [resolvable:$true] %s148_s25 }
   0xd   : > { %p749_p7 = pnand %p418_p4, %p136_p6  ;;  %p421_p8 = scmp.ge.s32.totalorder %s671_s17, 2 }
   0xe   : > { %s158_s29 = sshll.u32 %s850_s1, 4  ;;  %s673_s30 = smov [#allocation2]   ;;  %s159_s29 = int_to_ptr.hbm [resolvable:$true] %s158_s29 }
   0xf   : > { %p449_p9 = pneg %p749_p7  ;;  %s674_s4 = smov [#allocation6]  }
  0x10   : > { %p123_p11 = scmp.eq.s32.totalorder %s416_s18, 1  ;;  %s30_s5 = sadd.s32 1, %s667_s16 }
  0x11   : > { %p450_p10 = pnand %p449_p9, %p730_p1  ;;  %p31_p12 = scmp.ge.s32.totalorder %s30_s5, 2 }
  0x12   : > { %s84_s6 = sadd.s32 1, %s659_s14  ;;  %p91_p13 = scmp.ne.s32.totalorder %s659_s14, %s655_s13 }
  0x13   : > { %452 = dma.hbm_to_smem (!%p450_p10), %s149_s25, 16, %s673_s30, [#allocation5]  }
  0x14   : > { %455 = dma.hbm_to_smem (!%p450_p10), %s159_s29, 16, %s674_s4, [#allocation7]  }
  0x15   : > { %p92_p0 = scmp.eq.s32.totalorder %s671_s17, 0  ;;  %s864_s5 = smov (%p31_p12, %s30_s5), 0 }
  0x16   : > { %p768_p2 = por %p123_p11, %p91_p13  ;;  %p466_p4 = scmp.lt.s32.totalorder %s671_s17, 2 }
  0x17   : > { %s80_s8 = ssub.s32 %s667_s16, %s864_s5  ;;  %s169_s9 = sand.u32 1, %s659_s14  }
  0x18   : > { %p82_p6 = scmp.eq.s32.totalorder %s80_s8, 0  ;;  %p93_p9 = por %p92_p0, %p91_p13 }
  0x19   : > { %s422_s10 = sshll.u32 %s169_s9, 3  ;;  %s423_s11 = sshll.u32 %s667_s16, 3 }
  0x1a   : > { %s778_s18 = scalar_select %p82_p6, %s659_s14, %s84_s6  }
  0x1b   : > { %s179_s24 = scalar_lea.hbm %s851_s2, %s423_s11  ;;  %s173_s27 = scalar_lea.vmem [#allocation8], %s422_s10 }
  0x1c   : > { %s181_s25 = sshll.u32 %s179_s24, 4  ;;  %s183_s28 = sshll.u32 %s173_s27, 4  ;;  %s182_s25 = int_to_ptr.hbm [resolvable:$true] %s181_s25  ;;  %s184_s28 = int_to_ptr.vmem [resolvable:$true] %s183_s28 }
  0x1d   : > { %p457_p10 = pnand %p466_p4, %p93_p9  ;;  %s170_s29 = scalar_lea.sflag [#allocation3], %s169_s9 }
  0x1e   : > { %192 = sbr.rel (%p749_p7) target bundleno = 83 (0x53), region = 32 }
  0x1f   : > { %459 = dma.hbm_to_vmem [thread:$0]  (!%p457_p10), %s182_s25, 128, %s184_s28, %s170_s29  }
  0x23   : > { %634 = dma.done.wait (%p730_p1), [#allocation5], 16  }
  0x24   : > { %636 = vsyncadd (%p730_p1), [#allocation5], 4294967280 }
  0x25   : > { %638 = dma.done.wait (%p730_p1), [#allocation7], 16  }
  0x26   : > { %640 = vsyncadd (%p730_p1), [#allocation7], 4294967280  ;;  %s796_s30 = sand.u32 1, %s655_s13  }
  0x27   : > { %s427_s26 = sshll.u32 %s796_s30, 3  ;;  %s205_s4 = scalar_lea.sflag [#allocation3], %s796_s30 }
  0x28   : > { %s802_s6 = scalar_lea.vmem [#allocation8], %s427_s26 }
  0x29   : > { %642 = dma.done.wait (%p736_p3), %s205_s4, 128  }
  0x2a   : > { %644 = vsyncadd (%p736_p3), %s205_s4, 4294967168 }
  0x2b   : > { %214 = sfence }
  0x2c   : > { %v234_v0 = vlaneseq  ;;  %v675_v11 = vmov 0   ;;  %s272_s20 = sld [smem:[#allocation2]]  ;;  %s434_s19 = sshll.u32 %s663_s15, 3  ;;  %v290_v31 = vld [vmem:[%s802_s6] sm:$0x3f] }
  0x2d   : > { %s274_s21 = sld [smem:[#allocation6]]  ;;  %s307_s25 = scalar_lea.hbm %s852_s3, %s434_s19 }
  0x2e   : > { %v235_v1 = vshrl.u32 %v234_v0, 7  ;;  %s429_s8 = sld [smem:[#allocation2 + $0x1]]  ;;  %s232_s15 = scalar_lea.vmem [#allocation9], %s427_s26 }
  0x2f   : > { %s430_s9 = sld [smem:[#allocation6 + $0x1]]  ;;  %s309_s27 = sshll.u32 %s232_s15, 4  ;;  %s310_s27 = int_to_ptr.vmem [resolvable:$true] %s309_s27 }
  0x30   : > { %v241_v2 = vand.u32 65535, %v235_v1  ;;  %v242_v3 = vshrl.u32 %v235_v1, 16  ;;  %s431_s10 = sld [smem:[#allocation2 + $0x2]]  ;;  %s311_s28 = sshll.u32 %s307_s25, 4  ;;  %s312_s28 = int_to_ptr.hbm [resolvable:$true] %s311_s28 }
  0x31   : > { %s432_s11 = sld [smem:[#allocation6 + $0x2]]  ;;  %s295_s29 = scalar_lea.sflag [#allocation4], %s796_s30 }
  0x32   : > { %v244_v4 = vmul.u32 43691, %v241_v2  ;;  %v245_v5 = vmul.u32 43690, %v241_v2  ;;  %v246_v6 = vmul.u32 43691, %v242_v3  ;;  %v247_v7 = vmul.u32 43690, %v242_v3  ;;  %s595_s4 = sshra.s32 %s312_s28, 4  ;;  %s601_s26 = scalar_lea.hbm %s852_s3, 16  ;;  %s596_s4 = int_to_ptr.hbm [resolvable:$true] %s595_s4 }
  0x33   : > { %v273_v24 = vstv %s272_s20  ;;  %v275_v25 = vstv %s274_s21  ;;  %s597_s20 = scalar_lea.hbm %s596_s4, 8  ;;  %p602_p11 = scmp.lt.s32.totalorder %s596_s4, %s852_s3 }
  0x34   : > { %v248_v8 = vshll.u32 %v245_v5, 16  ;;  %v250_v9 = vshll.u32 %v246_v6, 16  ;;  %v249_v13 = vshrl.u32 %v245_v5, 16  ;;  %v251_v16 = vshrl.u32 %v246_v6, 16  ;;  %p598_p1 = scmp.ne.s32.totalorder %s596_s4, %s597_s20  ;;  %p603_p12 = scmp.lt.s32.totalorder %s601_s26, %s597_s20 }
  0x35   : > { %v278_v26 = vstv %s429_s8  ;;  %v281_v27 = vstv %s430_s9 }
  0x36   : > { %vm252_vm0 = vc.u32 %v244_v4, %v248_v8  ;;  %v254_v10 = vadd.s32 %v248_v8, %v244_v4  ;;  %v285_v29 = vstv %s431_s10  ;;  %p599_p3 = pnand %p598_p1, %p768_p2  ;;  %p604_p13 = por %p603_p12, %p602_p11 }
  0x37   : > { %v253_v12 = vsel %vm252_vm0, 1, %v675_v11  ;;  %v288_v30 = vstv %s432_s11 }
  0x38   : > { %v255_v14 = vadd.s32 %v253_v12, %v247_v7  ;;  %vm256_vm1 = vc.u32 %v254_v10, %v250_v9  ;;  %p600_p7 = pneg %p599_p3 }
  0x39   : > { %v257_v15 = vsel %vm256_vm1, 1, %v675_v11 }
  0x3a   : > { %v259_v17 = vadd.s32 %v257_v15, %v255_v14  ;;  %p605_p0 = pnand %p604_p13, %p600_p7 }
  0x3c   : > { %v260_v18 = vadd.s32 %v259_v17, %v249_v13 }
  0x3e   : > { %v261_v19 = vadd.s32 %v260_v18, %v251_v16 }
  0x40   : > { %v262_v20 = vshrl.u32 %v261_v19, 1 }
  0x42   : > { %v263_v21 = vmul.u32 3, %v262_v20 }
  0x44   : > { %v264_v22 = vsub.s32 %v235_v1, %v263_v21 }
  0x46   : > { %vm267_vm2 = vcmp.ne.s32.totalorder %v264_v22, 0  ;;  %vm268_vm3 = vcmp.lt.s32.totalorder %v264_v22, 0  ;;  %v270_v23 = vadd.s32 3, %v264_v22 }
  0x47   : > { %vm269_vm4 = vmand %vm268_vm3, %vm267_vm2 }
  0x48   : > { %v271_v28 = vsel %vm269_vm4, %v270_v23, %v264_v22 }
  0x49   : > { %vm276_vm5 = vcmp.eq.s32.totalorder %v271_v28, 1  ;;  %vm283_vm6 = vcmp.eq.s32.totalorder %v271_v28, 2 }
  0x4a   : > { %v279_v32 = vsel %vm276_vm5, %v278_v26, %v273_v24  ;;  %v282_v33 = vsel %vm276_vm5, %v281_v27, %v275_v25 }
  0x4b   : > { %v286_v34 = vsel %vm283_vm6, %v285_v29, %v279_v32  ;;  %v289_v35 = vsel %vm283_vm6, %v288_v30, %v282_v33 }
  0x4c   : > { %v291_v36 = vmul.f32 %v290_v31, %v286_v34 }
  0x4e   : > { %v292_v37 = vadd.f32 %v291_v36, %v289_v35 }
  0x50   : > { %293 = vst [vmem:[%s232_s15] sm:$0x3f] %v292_v37 }
  0x51   : > { %608 = shalt.err (!%p605_p0)
}
  0x52   : > { %447 = dma.vmem_to_hbm [thread:$0]  (%p768_p2), %s310_s27, 128, %s312_s28, %s295_s29  }
  0x53 PF: > { %s323_s30 = sand.u32 1, %s651_s12   ;;  %p461_p4 = pnand %p421_p8, %p741_p5 }
  0x54   : > { %s324_s10 = scalar_lea.sflag [#allocation4], %s323_s30 }
  0x55   : > { %p462_p6 = pneg %p461_p4 }
  0x57   : > { %646 = dma.done.wait (%p462_p6), %s324_s10, 128  }
  0x58   : > { %648 = vsyncadd (%p462_p6), %s324_s10, 4294967168  ;;  %s21_s17 = sadd.s32 1, %s671_s17   ;;  %s858_s12 = smov %s655_s13 }
  0x59   : > { %p18_p9 = scmp.ge.s32.totalorder %s21_s17, 4   ;;  %s859_s13 = smov %s659_s14 }
  0x5a   : > { %s860_s14 = smov %s778_s18  ;;  %s861_s15 = smov %s667_s16 }
  0x5b   : > { %s862_s16 = smov %s864_s5  ;;  %20 = sbr.rel (!%p18_p9) target bundleno = 8 (0x8), region = 86 }
  0x60   :  { %330 = vsyncpa [#allocation3], 1 }
  0x61   :  { %332 = vsyncpa [#allocation3 + $0x1], 1 }
  0x62   :  { %333 = vsyncpa [#allocation4], 1 }
  0x63   :  { %335 = vsyncpa [#allocation4 + $0x1], 1 }
  0x64   :  { %336 = vsyncpa [#allocation5], 1 }
  0x65   :  { %338 = vsyncpa [#allocation5 + $0x1], 1 }
  0x66   :  { %339 = vsyncpa [#allocation7], 1 }

</bundles_post_ra>
